<compile_context>
chip_gen: v5e
topology: v5e:2x2
jax: 0.10.0
libtpu: 0.0.40
codegen_flags: <defaults>
</compile_context>

<pallas_src>
import math

import jax
import jax.numpy as jnp
from jax.experimental import pallas as pl
from jax.experimental.pallas import tpu as pltpu

_INV_SQRT2 = 1.0 / math.sqrt(2.0)


def mlp_kernel(x_ref, w1_ref, b1_ref, w2_ref, b2_ref, o_ref):
    """One batch tile: (x @ W1 + b1) -> exact GELU -> (@ W2 + b2)."""
    # In-kernel cast to the compute dtype (bf16 or fp32). Cheap VPU convert in
    # a slot with slack; avoids a separate out-of-kernel astype pass over HBM.
    x = x_ref[...].astype(w1_ref.dtype)                        # [TB, in_dim]
    # ---- linear1 on the MXU, fp32 accumulation; bias add in fp32 ----
    h = jnp.dot(x, w1_ref[...], preferred_element_type=jnp.float32) + b1_ref[...]
    # ---- dropout1: nn.Dropout() is identity at inference time ----
    # TODO(synk): training-mode dropout (p=0.5) would need pltpu.prng_random_bits masking.
    # ---- exact GELU (erf), matches torch.nn.GELU(approximate='none') ----
    g = 0.5 * h * (1.0 + jax.lax.erf(h * jnp.float32(_INV_SQRT2)))
    # ---- linear2 on the MXU (operands in compute dtype, fp32 accumulation) ----
    out = jnp.dot(g.astype(w2_ref.dtype), w2_ref[...],
                  preferred_element_type=jnp.float32) + b2_ref[...]
    o_ref[...] = out.astype(o_ref.dtype)                       # [TB, out_dim] dense, contiguous store


def prepare_params(w1, b1, w2, b2, *, compute_dtype=jnp.bfloat16):
    """One-time (per-model) casts: matmul operands to compute dtype, biases fp32."""
    return (w1.astype(compute_dtype), b1.astype(jnp.float32),
            w2.astype(compute_dtype), b2.astype(jnp.float32))


def mlp_forward(x, w1c, b1c, w2c, b2c, *, block_b=4096):
    """x: [B, in_dim] (any float dtype); w1c: [in_dim, hidden]; b1c: [1, hidden];
    w2c: [hidden, out_dim]; b2c: [1, out_dim]. Weights already prepared via prepare_params."""
    B, in_dim = x.shape
    hidden = w1c.shape[1]
    out_dim = w2c.shape[1]

    # Batch tile: large (default 4 Ki rows) to amortize the ~0.35 us per-grid-step
    # overhead, but capped so the grid has >=4 steps when B allows (>=2 per
    # TensorCore on v7x with the "parallel" batch axis, still double-buffered).
    # Multiple of 8 (sublane) unless it equals the full batch.
    tb = min(block_b, B)
    cap = (pl.cdiv(B, 4) // 8) * 8
    if cap >= 8:
        tb = min(tb, cap)
    if tb != B:
        tb = max(8, (tb // 8) * 8)
    grid = (pl.cdiv(B, tb),)

    flops = 2 * B * (in_dim * hidden + hidden * out_dim)
    bytes_accessed = int(
        x.size * x.dtype.itemsize
        + w1c.size * w1c.dtype.itemsize
        + w2c.size * w2c.dtype.itemsize
        + b1c.size * b1c.dtype.itemsize
        + b2c.size * b2c.dtype.itemsize
        + B * out_dim * 4
    )

    return pl.pallas_call(
        mlp_kernel,
        out_shape=jax.ShapeDtypeStruct((B, out_dim), jnp.float32),
        grid=grid,
        in_specs=[
            pl.BlockSpec((tb, in_dim), lambda i: (i, 0)),       # x: streamed per batch tile
            pl.BlockSpec((in_dim, hidden), lambda i: (0, 0)),   # W1: resident
            pl.BlockSpec((1, hidden), lambda i: (0, 0)),        # b1: resident
            pl.BlockSpec((hidden, out_dim), lambda i: (0, 0)),  # W2: resident
            pl.BlockSpec((1, out_dim), lambda i: (0, 0)),       # b2: resident
        ],
        out_specs=pl.BlockSpec((tb, out_dim), lambda i: (i, 0)),
        compiler_params=pltpu.CompilerParams(
            dimension_semantics=("parallel",),                  # shard batch tiles across TCs (v7x)
        ),
        cost_estimate=pl.CostEstimate(
            flops=flops,
            transcendentals=B * hidden,                         # one erf per hidden activation
            bytes_accessed=bytes_accessed,
        ),
    )(x, w1c, b1c, w2c, b2c)


def init_params(key, in_dim, hidden, out_dim):
    """Deterministic init mimicking nn.Linear's uniform(-1/sqrt(fan_in), +1/sqrt(fan_in))."""
    k1, k2, k3, k4 = jax.random.split(key, 4)
    bound1 = 1.0 / math.sqrt(in_dim)
    bound2 = 1.0 / math.sqrt(hidden)
    # stored transposed relative to PyTorch: [in, out]
    w1 = jax.random.uniform(k1, (in_dim, hidden), jnp.float32, -bound1, bound1)
    b1 = jax.random.uniform(k2, (1, hidden), jnp.float32, -bound1, bound1)
    w2 = jax.random.uniform(k3, (hidden, out_dim), jnp.float32, -bound2, bound2)
    b2 = jax.random.uniform(k4, (1, out_dim), jnp.float32, -bound2, bound2)
    return w1, b1, w2, b2


def mlp_reference(x, w1, b1, w2, b2):
    h = x @ w1 + b1
    g = 0.5 * h * (1.0 + jax.lax.erf(h / jnp.sqrt(2.0)))
    return g @ w2 + b2


if __name__ == "__main__":
    in_dim, hidden, out_dim = 32, 64, 16
    key = jax.random.PRNGKey(0)
    kx, kp, kx2 = jax.random.split(key, 3)
    w1, b1, w2, b2 = init_params(kp, in_dim, hidden, out_dim)

    # One-time weight preparation (hoisted out of the forward wrapper).
    params_f32 = prepare_params(w1, b1, w2, b2, compute_dtype=jnp.float32)
    params_bf16 = prepare_params(w1, b1, w2, b2, compute_dtype=jnp.bfloat16)

    # --- small-shape check, fp32 compute path (bit-tight vs reference) ---
    B = 8
    x = jax.random.normal(kx, (B, in_dim), jnp.float32)
    ref = mlp_reference(x, w1, b1, w2, b2)

    out_f32 = jax.block_until_ready(mlp_forward(x, *params_f32))
    assert out_f32.shape == (B, out_dim)
    assert jnp.allclose(out_f32, ref, atol=1e-5, rtol=1e-5), "fp32 path mismatch vs reference"

    # --- default bf16-operand / fp32-accumulate path (loose tolerance) ---
    out_bf16 = jax.block_until_ready(mlp_forward(x, *params_bf16))
    assert out_bf16.shape == (B, out_dim)
    assert jnp.allclose(out_bf16, ref, atol=5e-2, rtol=5e-2), "bf16 path mismatch vs reference"

    # --- larger batch to exercise the multi-step, pipelined grid (4 tiles) ---
    B2 = 4096
    x2 = jax.random.normal(kx2, (B2, in_dim), jnp.float32)
    ref2 = mlp_reference(x2, w1, b1, w2, b2)
    out2 = jax.block_until_ready(mlp_forward(x2, *params_f32))
    assert out2.shape == (B2, out_dim)
    assert jnp.allclose(out2, ref2, atol=1e-5, rtol=1e-5), "tiled fp32 path mismatch vs reference"

    # bf16 path at scale as well (default operating point)
    out2_bf16 = jax.block_until_ready(mlp_forward(x2, *params_bf16))
    assert out2_bf16.shape == (B2, out_dim)
    assert jnp.allclose(out2_bf16, ref2, atol=5e-2, rtol=5e-2), "tiled bf16 path mismatch vs reference"

    print("KERNEL_OK")
</pallas_src>

<mosaic_0001>
module attributes {stable_mosaic.version = 11 : i64} {
  func.func @mlp_kernel(%arg0: i32, %arg1: memref<8x32xf32, #tpu.memory_space<vmem>>, %arg2: memref<32x64xf32, #tpu.memory_space<vmem>>, %arg3: memref<1x64xf32, #tpu.memory_space<vmem>>, %arg4: memref<64x16xf32, #tpu.memory_space<vmem>>, %arg5: memref<1x16xf32, #tpu.memory_space<vmem>>, %arg6: memref<8x16xf32, #tpu.memory_space<vmem>>) attributes {dimension_semantics = [#tpu.dimension_semantics<parallel>], iteration_bounds = array<i64: 1>, scalar_prefetch = 0 : i64, scratch_operands = 0 : i64, tpu.core_type = #tpu.core_type<tc>, window_params = [{transform_indices = @transform_0, window_bounds = array<i64: 8, 32>}, {pipeline_mode = #tpu.pipeline_mode<synchronous>, transform_indices = @transform_1, window_bounds = array<i64: 32, 64>}, {pipeline_mode = #tpu.pipeline_mode<synchronous>, transform_indices = @transform_2, window_bounds = array<i64: 1, 64>}, {pipeline_mode = #tpu.pipeline_mode<synchronous>, transform_indices = @transform_3, window_bounds = array<i64: 64, 16>}, {pipeline_mode = #tpu.pipeline_mode<synchronous>, transform_indices = @transform_4, window_bounds = array<i64: 1, 16>}, {transform_indices = @transform_5, window_bounds = array<i64: 8, 16>}]} {
    %c0 = arith.constant 0 : index
    %c0_0 = arith.constant 0 : index
    %0 = vector.load %arg1[%c0, %c0_0] : memref<8x32xf32, #tpu.memory_space<vmem>>, vector<8x32xf32>
    %c0_1 = arith.constant 0 : index
    %c0_2 = arith.constant 0 : index
    %1 = vector.load %arg2[%c0_1, %c0_2] : memref<32x64xf32, #tpu.memory_space<vmem>>, vector<32x64xf32>
    %cst = arith.constant dense<0.000000e+00> : vector<8x64xf32>
    %2 = tpu.matmul %0, %1, %cst {dimension_numbers = #tpu.dot_dimension_numbers<[1], [0], [0], [1], [0, 0, 1, 1], [], []>} : vector<8x32xf32>, vector<32x64xf32>, vector<8x64xf32> -> vector<8x64xf32>
    %c0_3 = arith.constant 0 : index
    %c0_4 = arith.constant 0 : index
    %3 = vector.load %arg3[%c0_3, %c0_4] : memref<1x64xf32, #tpu.memory_space<vmem>>, vector<1x64xf32>
    %4 = vector.broadcast %3 : vector<1x64xf32> to vector<8x64xf32>
    %5 = arith.addf %2, %4 : vector<8x64xf32>
    %cst_5 = arith.constant 5.000000e-01 : f32
    %6 = vector.broadcast %cst_5 : f32 to vector<8x64xf32>
    %7 = arith.mulf %6, %5 : vector<8x64xf32>
    %cst_6 = arith.constant 0.707106769 : f32
    %8 = vector.broadcast %cst_6 : f32 to vector<8x64xf32>
    %9 = arith.mulf %5, %8 : vector<8x64xf32>
    %10 = math.erf %9 : vector<8x64xf32>
    %cst_7 = arith.constant 1.000000e+00 : f32
    %11 = vector.broadcast %cst_7 : f32 to vector<8x64xf32>
    %12 = arith.addf %11, %10 : vector<8x64xf32>
    %13 = arith.mulf %7, %12 : vector<8x64xf32>
    %c0_8 = arith.constant 0 : index
    %c0_9 = arith.constant 0 : index
    %14 = vector.load %arg4[%c0_8, %c0_9] : memref<64x16xf32, #tpu.memory_space<vmem>>, vector<64x16xf32>
    %cst_10 = arith.constant dense<0.000000e+00> : vector<8x16xf32>
    %15 = tpu.matmul %13, %14, %cst_10 {dimension_numbers = #tpu.dot_dimension_numbers<[1], [0], [0], [1], [0, 0, 1, 1], [], []>} : vector<8x64xf32>, vector<64x16xf32>, vector<8x16xf32> -> vector<8x16xf32>
    %c0_11 = arith.constant 0 : index
    %c0_12 = arith.constant 0 : index
    %16 = vector.load %arg5[%c0_11, %c0_12] : memref<1x16xf32, #tpu.memory_space<vmem>>, vector<1x16xf32>
    %17 = vector.broadcast %16 : vector<1x16xf32> to vector<8x16xf32>
    %18 = arith.addf %15, %17 : vector<8x16xf32>
    %c0_13 = arith.constant 0 : index
    %c0_14 = arith.constant 0 : index
    %19 = vector.load %arg6[%c0_13, %c0_14] : memref<8x16xf32, #tpu.memory_space<vmem>>, vector<8x16xf32>
    tpu.vector_store %arg6[%c0_13, %c0_14], %18 {strides = array<i32>} : memref<8x16xf32, #tpu.memory_space<vmem>>, vector<8x16xf32>,
    return
  }
  func.func @transform_0(%arg0: i32) -> (i32, i32) {
    %c0_i32 = arith.constant 0 : i32
    %c0_i32_0 = arith.constant 0 : i32
    return %arg0, %c0_i32 : i32, i32
  }
  func.func @transform_1(%arg0: i32) -> (i32, i32) {
    %c0_i32 = arith.constant 0 : i32
    %c0_i32_0 = arith.constant 0 : i32
    %c0_i32_1 = arith.constant 0 : i32
    return %c0_i32, %c0_i32_0 : i32, i32
  }
  func.func @transform_2(%arg0: i32) -> (i32, i32) {
    %c0_i32 = arith.constant 0 : i32
    %c0_i32_0 = arith.constant 0 : i32
    %c0_i32_1 = arith.constant 0 : i32
    return %c0_i32, %c0_i32_0 : i32, i32
  }
  func.func @transform_3(%arg0: i32) -> (i32, i32) {
    %c0_i32 = arith.constant 0 : i32
    %c0_i32_0 = arith.constant 0 : i32
    %c0_i32_1 = arith.constant 0 : i32
    return %c0_i32, %c0_i32_0 : i32, i32
  }
  func.func @transform_4(%arg0: i32) -> (i32, i32) {
    %c0_i32 = arith.constant 0 : i32
    %c0_i32_0 = arith.constant 0 : i32
    %c0_i32_1 = arith.constant 0 : i32
    return %c0_i32, %c0_i32_0 : i32, i32
  }
  func.func @transform_5(%arg0: i32) -> (i32, i32) {
    %c0_i32 = arith.constant 0 : i32
    %c0_i32_0 = arith.constant 0 : i32
    return %arg0, %c0_i32 : i32, i32
  }
}

</mosaic_0001>

<bundles_post_ra>
// kernel: tpu_custom_call.1
= control target key start
LH: loop header
LB: loop body
LE: loop exit
PB: predicated region body
PF: predicated region fallthrough
CT: control target
= control target key end

     0   :  { %s265_s0 = inlined_call_operand.vmem [shape: f32[8,32], index: 0, kind: input, shape index: {}]   ;;  %s266_s1 = inlined_call_operand.vmem [shape: f32[32,64], index: 1, kind: input, shape index: {}]   ;;  %s267_s2 = inlined_call_operand.vmem [shape: f32[1,64], index: 2, kind: input, shape index: {}]   ;;  %s268_s3 = inlined_call_operand.vmem [shape: f32[64,16], index: 3, kind: input, shape index: {}]   ;;  %s269_s4 = inlined_call_operand.vmem [shape: f32[1,16], index: 4, kind: input, shape index: {}]   ;;  %s270_s5 = inlined_call_operand.hbm [shape: f32[8,16], index: 5, kind: output, shape index: {}]  }
   0x1   :  { %v25_v0 = vld [vmem:[%s266_s1 + $0x18] sm:$0xff]  ;;  %v24_v1 = vld [vmem:[%s266_s1 + $0x10] sm:$0xff]  ;;  %v23_v2 = vld [vmem:[%s266_s1 + $0x8] sm:$0xff] }
   0x2   :  { %46 = vmatpush.msra.mxu0 %v25_v0 }
   0x3   :  { %10 = vsyncpa [#allocation3], 0  ;;  %v22_v3 = vld [vmem:[%s266_s1] sm:$0xff]  ;;  %vm30_vm0 = vcmask 261120   ;;  %v105_v11 = vld [vmem:[%s268_s3 + $0x38] sm:$0xff]  ;;  %vm110_vm5 = vcmask 523264  }
   0x4   :  { %47 = vmatpush.msra.mxu0 %v24_v1  ;;  %v21_v4 = vld [vmem:[%s265_s0] sm:$0xff]  ;;  %122 = vmatpush.msra.mxu1 %v105_v11  ;;  %v104_v14 = vld [vmem:[%s268_s3 + $0x30] sm:$0xff]  ;;  %v103_v17 = vld [vmem:[%s268_s3 + $0x28] sm:$0xff]  ;;  %s186_s19 = smov [#allocation2]   ;;  %s143_s23 = sshll.u32 %s270_s5, 4  ;;  %vm134_vm6 = vcmask 130048   ;;  %s144_s23 = int_to_ptr.hbm [resolvable:$true] %s143_s23 }
   0x5   :  { %v156_v5 = vld [vmem:[%s267_s2] ss:$0 sm:$0xff]  ;;  %v101_v21 = vld [vmem:[%s268_s3 + $0x18] sm:$0xff]  ;;  %v100_v23 = vld [vmem:[%s268_s3 + $0x10] sm:$0xff]  ;;  %s141_s20 = sshll.u32 %s186_s19, 4  ;;  %s142_s20 = int_to_ptr.vmem [resolvable:$true] %s141_s20 }
   0x6   :  { %48 = vmatpush.msra.mxu0 %v23_v2  ;;  %123 = vmatpush.msra.mxu1 %v104_v14  ;;  %v102_v20 = vld [vmem:[%s268_s3 + $0x20] sm:$0xff]  ;;  %v99_v26 = vld [vmem:[%s268_s3 + $0x8] sm:$0xff] }
   0x7   :  { %v98_v28 = vld [vmem:[%s268_s3] sm:$0xff] }
   0x8   :  { %49 = vmatpush.msra.mxu0 %v22_v3  ;;  %124 = vmatpush.msra.mxu1 %v103_v17  ;;  %v157_v55 = vld [vmem:[%s269_s4] ss:$0 sm:$0xff] }
   0x9   :  { %152 = vmatmul.msk.f32.vlgmr.msra.gmra.mxu0 %vm30_vm0, %v21_v4 }
   0xa   :  { %125 = vmatpush.msra.mxu1 %v102_v20 }
   0xc   :  { %126 = vmatpush.msra.mxu1 %v101_v21 }
   0xe   :  { %127 = vmatpush.msra.mxu1 %v100_v23 }
  0x10   :  { %128 = vmatpush.msra.mxu1 %v99_v26 }
  0x12   :  { %129 = vmatpush.msra.mxu1 %v98_v28 }
  0x86   :  { %v51_v6 = vpop.f32.mrf.mxu0 }
  0x87   :  { %v52_v7 = vadd.f32 %v156_v5, %v51_v6 }
  0x89   :  { %v55_v8 = vmul.f32 0.70710677, %v52_v7  ;;  %v54_v52 = vmul.f32 0.5, %v52_v7 }
  0x8b   :  { %v56_v9 = vmul.f32 %v55_v8, %v55_v8 }
  0x8d   :  { %v57_v10 = vmin.f32 %v56_v9, 16.0 }
  0x8f   :  { %v58_v12 = vmul.f32 2.1237322e-06, %v57_v10  ;;  %v69_v13 = vmul.f32 3.8918573e-05, %v57_v10 }
  0x91   :  { %v59_v15 = vadd.f32 0.00028619796, %v58_v12  ;;  %v70_v16 = vadd.f32 0.001143296, %v69_v13 }
  0x93   :  { %v60_v18 = vmul.f32 %v59_v15, %v57_v10  ;;  %v71_v19 = vmul.f32 %v70_v16, %v57_v10 }
  0x95   :  { %v72_v22 = vadd.f32 0.014752088, %v71_v19  ;;  %v61_v24 = vadd.f32 0.0036580483, %v60_v18 }
  0x97   :  { %v73_v25 = vmul.f32 %v72_v22, %v57_v10  ;;  %v62_v29 = vmul.f32 %v61_v24, %v57_v10 }
  0x99   :  { %v74_v27 = vadd.f32 0.112945676, %v73_v25  ;;  %v63_v32 = vadd.f32 0.05243302, %v62_v29 }
  0x9b   :  { %v75_v30 = vmul.f32 %v74_v27, %v57_v10  ;;  %v64_v35 = vmul.f32 %v63_v32, %v57_v10 }
  0x9d   :  { %v76_v31 = vadd.f32 0.4994258, %v75_v30  ;;  %v65_v36 = vadd.f32 0.18741608, %v64_v35 }
  0x9f   :  { %v77_v33 = vmul.f32 %v76_v31, %v57_v10  ;;  %v66_v38 = vmul.f32 %v65_v36, %v57_v10 }
  0xa1   :  { %v78_v34 = vadd.f32 1.0, %v77_v33  ;;  %v67_v42 = vadd.f32 1.1283791, %v66_v38 }
  0xa3   :  { %158 = vrcp.f32 %v78_v34  ;;  %v90_v41 = vand.u32 2147483648, %v78_v34  ;;  %v88_v44 = vand.u32 2147483647, %v78_v34  ;;  %vm84_vm2 = vweird.f32 %v78_v34 }
  0xa4   :  { %v68_v47 = vmul.f32 %v67_v42, %v55_v8 }
  0xa5   :  { %v91_v46 = vor.u32 1.1754944e-38, %v90_v41  ;;  %vm89_vm4 = vcmp.eq.f32.partialorder %v88_v44, 8.507059e+37 }
  0xa9   :  { %v159_v37 = vpop.eup %158 }
  0xaa   :  { %v80_v39 = vmul.f32 %v159_v37, %v78_v34  ;;  %vm85_vm1 = vweird.f32 %v159_v37 }
  0xab   :  { %vm86_vm3 = vmor %vm84_vm2, %vm85_vm1 }
  0xac   :  { %v81_v40 = vsub.f32 1.0, %v80_v39 }
  0xae   :  { %v82_v43 = vmul.f32 %v159_v37, %v81_v40 }
  0xb0   :  { %v83_v45 = vadd.f32 %v159_v37, %v82_v43 }
  0xb2   :  { %v87_v48 = vsel %vm86_vm3, %v159_v37, %v83_v45 }
  0xb3   :  { %v92_v49 = vsel %vm89_vm4, %v91_v46, %v87_v48 }
  0xb4   :  { %v93_v50 = vmul.f32 %v92_v49, %v68_v47 }
  0xb6   :  { %v153_v51 = vclamps-f32 %v93_v50, 1.0 }
  0xb8   :  { %v96_v53 = vadd.f32 1.0, %v153_v51 }
  0xba   :  { %v97_v54 = vmul.f32 %v96_v53, %v54_v52 }
  0xbc   :  { %154 = vmatmul.msk.f32.vlgmr.msra.gmra.mxu1 %vm110_vm5, %v97_v54 }
 0x139   :  { %v131_v56 = vpop.f32.mrf.mxu1 }
 0x13a   :  { %v132_v57 = vadd.f32 %v157_v55, %v131_v56 }
 0x13c   :  { %135 = vst.msk [vmem:[#allocation2] sm:$0xff] %vm134_vm6, %v132_v57 }
 0x13d   :  { %146 = dma.vmem_to_hbm [thread:$0]  %s142_s20, 128, %s144_s23, [#allocation3]  }
 0x13e   :  { %184 = dma.done.wait [#allocation3], 128  }
 0x13f   :  { %185 = vsyncadd [#allocation3], 4294967168 }
 0x140   :  { %151 = vsyncpa [#allocation3], 1 }

</bundles_post_ra>
